<compile_context>
chip_gen: v7x
topology: tpu7x:2x2x1
jax: 0.10.0
libtpu: 0.0.40
codegen_flags: <defaults>
</compile_context>

<pallas_src>
import jax
import jax.numpy as jnp
from jax.experimental import pallas as pl
from jax.experimental.pallas import tpu as pltpu


def _film_kernel(x_ref, g_ref, b_ref, o_ref):
    # x: (tr, thw)   rows = flattened (batch, channel), lanes = flattened (H, W) slice
    # g, b: (tr, 1)  per-row f32 scalars; lane broadcast is a free VPU broadcast.
    x = x_ref[...].astype(jnp.float32)
    o_ref[...] = (x * g_ref[...] + b_ref[...]).astype(o_ref.dtype)


def _sublane_multiple(dtype):
    # Packed-sublane multiple: 8 for 32-bit, 16 for bf16/f16, 32 for int8/fp8.
    return max(8, 32 // jnp.dtype(dtype).itemsize)


def _vmem_budget_bytes():
    # Conservative resident-footprint budget: fits v5e's 16 MiB scoped-VMEM default and
    # leaves most of v7x's 64 MiB physical VMEM free.  Scale down for small parts if the
    # hardware can be queried at trace time.
    cap = 64 << 20
    try:
        info = pltpu.get_tpu_info()
        cap = int(getattr(info, "vmem_capacity_bytes", cap) or cap)
    except Exception:
        pass
    return min(10 << 20, cap // 4)


def _pick_tiles(rows, hw_p, in_itemsize, out_itemsize, sublane_mult,
                vmem_budget_bytes, target_tile_bytes=1 << 20):
    """Pick (tr, thw): row tile (multiple of sublane_mult or full dim) and lane tile
    (multiple of 128 or full padded dim), sized so the full double-buffered pipeline
    footprint fits the VMEM budget and x tiles stay near ~1 MiB."""
    per_elem = 2 * (in_itemsize + out_itemsize)   # double-buffered x + out, per element
    gb_per_row = 2 * 2 * 128 * 4                  # gamma + beta, lane-padded f32, 2 buffers

    # Lane tile: full padded hw if a minimal row tile still fits the target, else the
    # largest multiple of 128 that does (keeps blocks lane-dense and unmasked).
    min_rows = min(rows, sublane_mult)
    max_thw = max(128, (target_tile_bytes // max(1, min_rows * in_itemsize)) // 128 * 128)
    thw = hw_p if hw_p <= max_thw else max_thw

    if rows <= sublane_mult:
        return rows, thw                          # full-dim row block (always legal)

    per_row = per_elem * thw + gb_per_row
    tr = min(rows,
             max(1, vmem_budget_bytes // per_row),                 # VMEM footprint cap
             max(1, target_tile_bytes // (thw * in_itemsize)))     # ~1 MiB x tile
    tr = max(sublane_mult, (tr // sublane_mult) * sublane_mult)

    # Keep a few row steps when the problem is big enough: overlaps in-DMA of step i+1 with
    # out-DMA of step i-1 and gives v7x's 2nd TensorCore independent parallel tiles.
    if pl.cdiv(hw_p, thw) == 1:
        if rows >= 4 * sublane_mult:
            min_steps = 4
        elif rows >= 2 * sublane_mult:
            min_steps = 2
        else:
            min_steps = 1
        while pl.cdiv(rows, tr) < min_steps and tr > sublane_mult:
            tr = max(sublane_mult, ((tr // 2) // sublane_mult) * sublane_mult)
    return tr, thw


def film(x, gamma, beta):
    """Pallas TPU FiLM. x: (B, C, H, W) NCHW, gamma/beta: (B, C). Returns (B, C, H, W)."""
    if x.ndim != 4 or gamma.ndim != 2 or beta.ndim != 2:
        raise ValueError(
            f"FiLM expects x (B,C,H,W) and gamma/beta (B,C); got "
            f"{x.shape}, {gamma.shape}, {beta.shape}")
    if gamma.shape[1] != x.shape[1]:
        raise ValueError(
            f"FiLM gamma/beta channel size ({gamma.shape[1]}) doesn't match "
            f"input feature channel size ({x.shape[1]})")
    if beta.shape != gamma.shape or gamma.shape[0] != x.shape[0]:
        raise ValueError(
            f"FiLM gamma/beta shape mismatch: gamma {gamma.shape}, beta {beta.shape}, "
            f"x batch {x.shape[0]}")

    B, C, H, W = x.shape
    rows, hw = B * C, H * W
    out_dtype = jnp.result_type(x.dtype, gamma.dtype, beta.dtype)

    # Plain-JAX layout glue: free reshapes; pad the lane axis to a multiple of 128 only if
    # needed so the kernel keeps unmasked full-width stores (padding sliced off afterwards).
    x2 = x.reshape(rows, hw)
    hw_p = pl.cdiv(hw, 128) * 128
    if hw_p != hw:
        x2 = jnp.pad(x2, ((0, 0), (0, hw_p - hw)))
    g2 = gamma.reshape(rows, 1).astype(jnp.float32)   # keep params f32 -> f32 math in-kernel
    b2 = beta.reshape(rows, 1).astype(jnp.float32)

    in_isz = jnp.dtype(x.dtype).itemsize
    out_isz = jnp.dtype(out_dtype).itemsize
    sub_m = _sublane_multiple(x.dtype)
    tr, thw = _pick_tiles(rows, hw_p, in_isz, out_isz, sub_m, _vmem_budget_bytes())

    grid = (pl.cdiv(rows, tr), pl.cdiv(hw_p, thw))

    # Actual resident pipeline footprint; request that much VMEM plus headroom.
    footprint = 2 * tr * thw * (in_isz + out_isz) + 2 * 2 * tr * 128 * 4
    vmem_limit = int(min(64 << 20, max(footprint + (2 << 20), 16 << 20)))

    out2 = pl.pallas_call(
        _film_kernel,
        out_shape=jax.ShapeDtypeStruct((rows, hw_p), out_dtype),
        grid=grid,
        in_specs=[
            pl.BlockSpec((tr, thw), lambda i, j: (i, j)),   # activations, lane-dense
            pl.BlockSpec((tr, 1), lambda i, j: (i, 0)),     # per-row gamma (f32)
            pl.BlockSpec((tr, 1), lambda i, j: (i, 0)),     # per-row beta (f32)
        ],
        out_specs=pl.BlockSpec((tr, thw), lambda i, j: (i, j)),
        compiler_params=pltpu.CompilerParams(
            dimension_semantics=("parallel", "parallel"),   # independent tiles (v7x: 2 TCs)
            vmem_limit_bytes=vmem_limit),
    )(x2, g2, b2)

    if hw_p != hw:
        out2 = out2[:, :hw]
    return out2.reshape(B, C, H, W)


if __name__ == "__main__":
    key = jax.random.PRNGKey(0)
    kx, kg, kb = jax.random.split(key, 3)
    B, C, H, W = 2, 4, 16, 16
    x = jax.random.normal(kx, (B, C, H, W), jnp.float32)
    gamma = jax.random.normal(kg, (B, C), jnp.float32)
    beta = jax.random.normal(kb, (B, C), jnp.float32)

    fwd = jax.jit(film)
    out = jax.block_until_ready(fwd(x, gamma, beta))

    # Reference (matches the PyTorch module exactly).
    ref = gamma[:, :, None, None] * x + beta[:, :, None, None]
    assert out.shape == (B, C, H, W), out.shape
    assert out.dtype == x.dtype, out.dtype
    assert bool(jnp.all(jnp.isfinite(out)))
    assert bool(jnp.allclose(out, ref, atol=1e-6, rtol=1e-6)), \
        float(jnp.max(jnp.abs(out - ref)))
    print("KERNEL_OK")
</pallas_src>

<mosaic_0001>
module attributes {stable_mosaic.version = 11 : i64} {
  func.func @_film_kernel(%arg0: i32, %arg1: i32, %arg2: memref<8x256xf32, #tpu.memory_space<vmem>>, %arg3: memref<8x1xf32, #tpu.memory_space<vmem>>, %arg4: memref<8x1xf32, #tpu.memory_space<vmem>>, %arg5: memref<8x256xf32, #tpu.memory_space<vmem>>) attributes {dimension_semantics = [#tpu.dimension_semantics<parallel>, #tpu.dimension_semantics<parallel>], iteration_bounds = array<i64: 1, 1>, scalar_prefetch = 0 : i64, scratch_operands = 0 : i64, tpu.core_type = #tpu.core_type<tc>, window_params = [{transform_indices = @transform_0, window_bounds = array<i64: 8, 256>}, {transform_indices = @transform_1, window_bounds = array<i64: 8, 1>}, {transform_indices = @transform_2, window_bounds = array<i64: 8, 1>}, {transform_indices = @transform_3, window_bounds = array<i64: 8, 256>}]} {
    %c0 = arith.constant 0 : index
    %c0_0 = arith.constant 0 : index
    %0 = vector.load %arg2[%c0, %c0_0] : memref<8x256xf32, #tpu.memory_space<vmem>>, vector<8x256xf32>
    %c0_1 = arith.constant 0 : index
    %c0_2 = arith.constant 0 : index
    %1 = vector.load %arg3[%c0_1, %c0_2] : memref<8x1xf32, #tpu.memory_space<vmem>>, vector<8x1xf32>
    %2 = vector.broadcast %1 : vector<8x1xf32> to vector<8x256xf32>
    %3 = arith.mulf %0, %2 : vector<8x256xf32>
    %c0_3 = arith.constant 0 : index
    %c0_4 = arith.constant 0 : index
    %4 = vector.load %arg4[%c0_3, %c0_4] : memref<8x1xf32, #tpu.memory_space<vmem>>, vector<8x1xf32>
    %5 = vector.broadcast %4 : vector<8x1xf32> to vector<8x256xf32>
    %6 = arith.addf %3, %5 : vector<8x256xf32>
    %c0_5 = arith.constant 0 : index
    %c0_6 = arith.constant 0 : index
    %7 = vector.load %arg5[%c0_5, %c0_6] : memref<8x256xf32, #tpu.memory_space<vmem>>, vector<8x256xf32>
    tpu.vector_store %arg5[%c0_5, %c0_6], %6 {strides = array<i32>} : memref<8x256xf32, #tpu.memory_space<vmem>>, vector<8x256xf32>,
    return
  }
  func.func @transform_0(%arg0: i32, %arg1: i32) -> (i32, i32) {
    %c0_i32 = arith.constant 0 : i32
    return %arg0, %arg1 : i32, i32
  }
  func.func @transform_1(%arg0: i32, %arg1: i32) -> (i32, i32) {
    %c0_i32 = arith.constant 0 : i32
    %c0_i32_0 = arith.constant 0 : i32
    return %arg0, %c0_i32 : i32, i32
  }
  func.func @transform_2(%arg0: i32, %arg1: i32) -> (i32, i32) {
    %c0_i32 = arith.constant 0 : i32
    %c0_i32_0 = arith.constant 0 : i32
    return %arg0, %c0_i32 : i32, i32
  }
  func.func @transform_3(%arg0: i32, %arg1: i32) -> (i32, i32) {
    %c0_i32 = arith.constant 0 : i32
    return %arg0, %arg1 : i32, i32
  }
}

</mosaic_0001>

<bundles_post_ra>
// kernel: film.1
= control target key start
LH: loop header
LB: loop body
LE: loop exit
PB: predicated region body
PF: predicated region fallthrough
CT: control target
= control target key end

     0   :  { %v40_v0 = vmov 0   ;;  %s79_s1 = inlined_call_operand.vmem [shape: f32[8,1], index: 1, kind: input, shape index: {}]   ;;  %s80_s2 = inlined_call_operand.vmem [shape: f32[8,1], index: 2, kind: input, shape index: {}]   ;;  %s81_s0 = inlined_call_operand.vmem [shape: f32[8,256], index: 0, kind: input, shape index: {}]   ;;  %s82_s3 = inlined_call_operand.vmem [shape: f32[8,256], index: 3, kind: output, shape index: {}]  }
   0x1   :  { %39 = vset.pattern.permute.xlu0 %v40_v0  ;;  %v16_v1 = vld [vmem:[%s79_s1] sm:$0xff]  ;;  %v15_v5 = vld [vmem:[%s81_s0 + $0x8] sm:$0xff] }
   0x2   :  { %19 = vperm.xlu0 %39, %v16_v1   ;;  %v24_v2 = vld [vmem:[%s80_s2] sm:$0xff] }
   0x3   :  { %v14_v4 = vld [vmem:[%s81_s0] sm:$0xff] }
   0x6   :  { %27 = vperm.xlu0 %39, %v24_v2  }
  0x81   :  { %v20_v3 = vpop.permute.xlu0 %19 }
  0x82   :  { %v22_v6 = vmul.f32 %v20_v3, %v14_v4  ;;  %v23_v7 = vmul.f32 %v20_v3, %v15_v5 }
  0x85   :  { %v28_v8 = vpop.permute.xlu0 %27 }
  0x86   :  { %v30_v9 = vadd.f32 %v28_v8, %v22_v6  ;;  %v31_v10 = vadd.f32 %v28_v8, %v23_v7 }
  0x88   :  { %32 = vst [vmem:[%s82_s3] sm:$0xff] %v30_v9  ;;  %33 = vst [vmem:[%s82_s3 + $0x8] sm:$0xff] %v31_v10 }

</bundles_post_ra>
